<compile_context>
chip_gen: v5e
topology: v5e:2x2
jax: 0.10.0
libtpu: 0.0.40
codegen_flags: <defaults>
</compile_context>

<pallas_src>
import jax
import jax.numpy as jnp
from jax.experimental import pallas as pl
from jax.experimental.pallas import tpu as pltpu

D = 10  # feature dim, matches nn.Parameter(torch.randn(10))


def _logreg_kernel(xw_ref, o_ref):
    # xw_ref: (2, D+1) f32 VMEM tile.
    #   row 0 = [x_0..x_{D-1}, 1.0]
    #   row 1 = [w_0..w_{D-1}, bias]
    # so sum(row0 * row1) == dot(x, w) + bias (bias folded via homogeneous lane).
    xw = xw_ref[...]
    z = jnp.sum(xw[0:1, :] * xw[1:2, :], axis=-1, keepdims=True)  # (1, 1)
    o_ref[...] = jax.nn.sigmoid(z)


def logistic_regression_forward_pallas(vector, weight, bias):
    """Pallas path. vector: (D,), weight: (D,), bias: (1,) -> (1,) float32."""
    one = jnp.ones((1,), jnp.float32)
    xw = jnp.stack(
        [
            jnp.concatenate([vector.astype(jnp.float32), one]),
            jnp.concatenate(
                [weight.astype(jnp.float32), bias.astype(jnp.float32).reshape((1,))]
            ),
        ]
    )  # (2, D+1): single input array -> single input DMA, no zero-pad fusions.

    out = pl.pallas_call(
        _logreg_kernel,
        out_shape=jax.ShapeDtypeStruct((1, 1), jnp.float32),
        in_specs=[pl.BlockSpec(memory_space=pltpu.MemorySpace.VMEM)],
        out_specs=pl.BlockSpec(memory_space=pltpu.MemorySpace.VMEM),
    )(xw)
    return out.reshape(1)


def logistic_regression_forward(vector, weight, bias):
    """Recommended B=1 production path (perf review): plain XLA fusion, no custom call."""
    return jax.nn.sigmoid(jnp.dot(vector, weight) + bias)


if __name__ == "__main__":
    key = jax.random.PRNGKey(0)
    k_vec, k_w, k_b = jax.random.split(key, 3)

    # Deterministic synthetic parameters (shapes from LogisticRegression.__init__).
    vector = jax.random.normal(k_vec, (D,), dtype=jnp.float32)
    weight = jax.random.normal(k_w, (D,), dtype=jnp.float32)
    bias = jax.random.normal(k_b, (1,), dtype=jnp.float32)

    # Run the Pallas kernel once and block on the result.
    out = logistic_regression_forward_pallas(vector, weight, bias)
    jax.block_until_ready(out)

    # Reference checks.
    ref = jax.nn.sigmoid(jnp.dot(vector, weight) + bias)
    fast = logistic_regression_forward(vector, weight, bias)
    assert out.shape == (1,)
    assert jnp.allclose(out, ref, atol=1e-6), (out, ref)
    assert jnp.allclose(fast, ref, atol=1e-6), (fast, ref)

    print("KERNEL_OK")
</pallas_src>

<mosaic_0001>
module attributes {stable_mosaic.version = 11 : i64} {
  func.func @_logreg_kernel(%arg0: memref<2x11xf32, #tpu.memory_space<vmem>>, %arg1: memref<1x1xf32, #tpu.memory_space<vmem>>) attributes {dimension_semantics = [], scalar_prefetch = 0 : i64, scratch_operands = 0 : i64, tpu.core_type = #tpu.core_type<tc>} {
    %c0 = arith.constant 0 : index
    %c0_0 = arith.constant 0 : index
    %0 = vector.load %arg0[%c0, %c0_0] : memref<2x11xf32, #tpu.memory_space<vmem>>, vector<2x11xf32>
    %1 = vector.extract_strided_slice %0 {offsets = [0, 0], sizes = [1, 11], strides = [1, 1]} : vector<2x11xf32> to vector<1x11xf32>
    %2 = vector.extract_strided_slice %0 {offsets = [1, 0], sizes = [1, 11], strides = [1, 1]} : vector<2x11xf32> to vector<1x11xf32>
    %3 = arith.mulf %1, %2 : vector<1x11xf32>
    %cst = arith.constant dense<0.000000e+00> : vector<1xf32>
    %4 = vector.multi_reduction <add>, %3, %cst [1] : vector<1x11xf32> to vector<1xf32>
    %5 = vector.shape_cast %4 : vector<1xf32> to vector<1x1xf32>
    %6 = arith.negf %5 : vector<1x1xf32>
    %7 = math.exp %6 : vector<1x1xf32>
    %cst_1 = arith.constant 1.000000e+00 : f32
    %8 = vector.broadcast %cst_1 : f32 to vector<1x1xf32>
    %9 = arith.addf %8, %7 : vector<1x1xf32>
    %10 = arith.divf %8, %9 : vector<1x1xf32>
    %c0_2 = arith.constant 0 : index
    %c0_3 = arith.constant 0 : index
    %11 = vector.load %arg1[%c0_2, %c0_3] : memref<1x1xf32, #tpu.memory_space<vmem>>, vector<1x1xf32>
    tpu.vector_store %arg1[%c0_2, %c0_3], %10 {strides = array<i32>} : memref<1x1xf32, #tpu.memory_space<vmem>>, vector<1x1xf32>,
    return
  }
}

</mosaic_0001>

<bundles_post_ra>
// kernel: tpu_custom_call.1
= control target key start
LH: loop header
LB: loop body
LE: loop exit
PB: predicated region body
PF: predicated region fallthrough
CT: control target
= control target key end

     0   :  { %6 = vsyncpa [#allocation3], 0  ;;  %s147_s0 = inlined_call_operand.hbm [shape: f32[2,11], index: 0, kind: input, shape index: {}]   ;;  %s148_s1 = inlined_call_operand.hbm [shape: f32[1,1], index: 1, kind: output, shape index: {}]  }
   0x1   :  { %7 = vsyncpa [#allocation4], 0  ;;  %s13_s8 = sshll.u32 %s147_s0, 4  ;;  %s129_s9 = smov [#allocation2]   ;;  %s14_s8 = int_to_ptr.hbm [resolvable:$true] %s13_s8 }
   0x2   :  { %s15_s10 = sshll.u32 %s129_s9, 4  ;;  %s16_s10 = int_to_ptr.vmem [resolvable:$true] %s15_s10 }
   0x3   :  { %18 = dma.hbm_to_vmem [thread:$0]  %s14_s8, 32, %s16_s10, [#allocation3]  }
   0x4   :  { %125 = dma.done.wait [#allocation3], 32  }
   0x5   :  { %126 = vsyncadd [#allocation3], 4294967264  ;;  %v23_v0 = vld [vmem:[#allocation2] sm:$0x3]  ;;  %vm28_vm0 = vcmask 81920   ;;  %s130_s0 = smov [#allocation5]  }
   0x6   :  { %v25_v1 = vrot.slane %v23_v0, 1  ;;  %s58_s11 = sshll.u32 %s130_s0, 4  ;;  %s60_s14 = sshll.u32 %s148_s1, 4  ;;  %vm51_vm4 = vcmask 0   ;;  %s59_s11 = int_to_ptr.vmem [resolvable:$true] %s58_s11  ;;  %s61_s14 = int_to_ptr.hbm [resolvable:$true] %s60_s14 }
   0x8   :  { %v27_v2 = vmul.f32 %v25_v1, %v23_v0 }
   0xa   :  { %v29_v3 = vsel %vm28_vm0, %v27_v2, 0.0 }
   0xb   :  { %30 = vadd.xlane.f32.xlu0 %v29_v3 }
  0x7e   :  { %v31_v4 = vpop.xlane.xlu0 %30 }
  0x7f   :  { %v70_v5 = vmul.f32 -1.442695, %v31_v4 }
  0x81   :  { %73 = vpow2.f32 %v70_v5 }
  0x87   :  { %v74_v6 = vpop.eup %73 }
  0x88   :  { %v35_v7 = vadd.f32 1.0, %v74_v6 }
  0x8a   :  { %75 = vrcp.f32 %v35_v7  ;;  %v47_v11 = vand.u32 2147483648, %v35_v7  ;;  %v45_v13 = vand.u32 2147483647, %v35_v7  ;;  %vm41_vm2 = vweird.f32 %v35_v7 }
  0x8c   :  { %v48_v15 = vor.u32 1.1754944e-38, %v47_v11  ;;  %vm46_vm5 = vcmp.eq.f32.partialorder %v45_v13, 8.507059e+37 }
  0x90   :  { %v76_v8 = vpop.eup %75 }
  0x91   :  { %v37_v9 = vmul.f32 %v76_v8, %v35_v7  ;;  %vm42_vm1 = vweird.f32 %v76_v8 }
  0x92   :  { %vm43_vm3 = vmor %vm41_vm2, %vm42_vm1 }
  0x93   :  { %v38_v10 = vsub.f32 1.0, %v37_v9 }
  0x95   :  { %v39_v12 = vmul.f32 %v76_v8, %v38_v10 }
  0x97   :  { %v40_v14 = vadd.f32 %v76_v8, %v39_v12 }
  0x99   :  { %v44_v16 = vsel %vm43_vm3, %v76_v8, %v40_v14 }
  0x9a   :  { %v49_v17 = vsel %vm46_vm5, %v48_v15, %v44_v16 }
  0x9b   :  { %52 = vst.msk [vmem:[#allocation5] sm:$0x1] %vm51_vm4, %v49_v17 }
  0x9c   :  { %63 = dma.vmem_to_hbm [thread:$0]  %s59_s11, 16, %s61_s14, [#allocation4]  }
  0x9d   :  { %127 = dma.done.wait [#allocation4], 16  }
  0x9e   :  { %128 = vsyncadd [#allocation4], 4294967280 }
  0x9f   :  { %68 = vsyncpa [#allocation3], 1 }
  0xa0   :  { %69 = vsyncpa [#allocation4], 1 }

</bundles_post_ra>
